<compile_context>
chip_gen: v6e
topology: v6e:2x2x1
jax: 0.10.0
libtpu: 0.0.40
codegen_flags: <defaults>
</compile_context>

<pallas_src>
import functools

import numpy as np

import jax
import jax.numpy as jnp
from jax.experimental import pallas as pl
from jax.experimental.pallas import tpu as pltpu


def _copy_kernel(x_ref, o_ref):
    # Pure passthrough of the current (tile_b, tile_v) VMEM block.
    o_ref[...] = x_ref[...]


def _identity_copy(x):
    """Optimized Pallas identity copy of a (batch, vocab) BOW tensor."""
    B, V = x.shape
    itemsize = jnp.dtype(x.dtype).itemsize
    # Sublane packing: f32 -> 8 rows/vreg, bf16 -> 16, int8/fp8 -> 32.
    sublane = {4: 8, 2: 16, 1: 32}.get(itemsize, 8)
    target_block_bytes = 2 * 1024 * 1024  # ~2 MiB per buffer

    row_bytes = V * itemsize
    if row_bytes * sublane <= target_block_bytes:
        # Lane-dense: full vocab resident in every block; tile rows only.
        tile_v = V
        max_rows = max(sublane,
                       (target_block_bytes // row_bytes) // sublane * sublane)
        tile_b = B if B <= max_rows else max_rows
    else:
        # Enormous vocab fallback: 128-lane-aligned vocab chunks.
        tile_b = B if B < sublane else sublane
        tile_v = max(128,
                     min(V, (target_block_bytes // (tile_b * itemsize))
                         // 128 * 128))

    grid = (pl.cdiv(B, tile_b), pl.cdiv(V, tile_v))
    spec = pl.BlockSpec((tile_b, tile_v), lambda i, j: (i, j))

    return pl.pallas_call(
        _copy_kernel,
        out_shape=jax.ShapeDtypeStruct((B, V), x.dtype),
        grid=grid,
        in_specs=[spec],
        out_specs=spec,
        # Alias output to input: no new HBM allocation for the passthrough.
        input_output_aliases={0: 0},
        cost_estimate=pl.CostEstimate(
            flops=0, transcendentals=0, bytes_accessed=2 * B * V * itemsize),
        compiler_params=pltpu.CompilerParams(
            dimension_semantics=("parallel", "parallel")),
    )(x)


# Donate the input so the input_output_aliases aliasing is honored end-to-end.
_identity_copy_jit = jax.jit(_identity_copy, donate_argnums=0)


def input_bow_forward(inputs: dict, *, use_kernel: bool = True):
    """Pallas equivalent of InputBOW.forward: returns inputs['x_bow'] unchanged.

    use_kernel=False is the true zero-copy passthrough (recommended in real
    pipelines); use_kernel=True routes through the aliased Pallas copy kernel.
    Note: the kernel path donates inputs['x_bow'] — do not reuse it afterwards.
    """
    x = inputs["x_bow"]
    if not use_kernel:
        return x
    return _identity_copy_jit(x)


if __name__ == "__main__":
    key = jax.random.PRNGKey(0)

    # Test 1: small f32 BOW tensor.
    batch, vocab = 8, 256
    x_bow = jax.random.uniform(key, (batch, vocab), dtype=jnp.float32)
    ref = np.asarray(x_bow)  # host copy (input is donated to the kernel)
    out = jax.block_until_ready(input_bow_forward({"x_bow": x_bow}))
    assert out.shape == ref.shape and out.dtype == ref.dtype
    assert np.array_equal(np.asarray(out), ref)

    # Test 2: non-tile-aligned bf16 shape (full-dim block path).
    k2 = jax.random.PRNGKey(1)
    x2 = jax.random.uniform(k2, (13, 384), dtype=jnp.float32).astype(jnp.bfloat16)
    ref2 = np.asarray(x2)
    out2 = jax.block_until_ready(input_bow_forward({"x_bow": x2}))
    assert out2.shape == ref2.shape and out2.dtype == ref2.dtype
    assert np.array_equal(np.asarray(out2), ref2)

    # Zero-copy (no-kernel) fast path also preserves semantics.
    x3 = jnp.arange(8 * 256, dtype=jnp.float32).reshape(8, 256)
    out3 = input_bow_forward({"x_bow": x3}, use_kernel=False)
    assert out3 is x3

    print("KERNEL_OK")
</pallas_src>

<mosaic_0001>
module attributes {stable_mosaic.version = 11 : i64} {
  func.func @_copy_kernel(%arg0: i32, %arg1: i32, %arg2: memref<8x256xf32, #tpu.memory_space<vmem>>, %arg3: memref<8x256xf32, #tpu.memory_space<vmem>>) attributes {dimension_semantics = [#tpu.dimension_semantics<parallel>, #tpu.dimension_semantics<parallel>], iteration_bounds = array<i64: 1, 1>, scalar_prefetch = 0 : i64, scratch_operands = 0 : i64, tpu.core_type = #tpu.core_type<tc>, window_params = [{transform_indices = @transform_0, window_bounds = array<i64: 8, 256>}, {transform_indices = @transform_1, window_bounds = array<i64: 8, 256>}]} {
    %c0 = arith.constant 0 : index
    %c0_0 = arith.constant 0 : index
    %0 = vector.load %arg2[%c0, %c0_0] : memref<8x256xf32, #tpu.memory_space<vmem>>, vector<8x256xf32>
    %c0_1 = arith.constant 0 : index
    %c0_2 = arith.constant 0 : index
    %1 = vector.load %arg3[%c0_1, %c0_2] : memref<8x256xf32, #tpu.memory_space<vmem>>, vector<8x256xf32>
    tpu.vector_store %arg3[%c0_1, %c0_2], %0 {strides = array<i32>} : memref<8x256xf32, #tpu.memory_space<vmem>>, vector<8x256xf32>,
    return
  }
  func.func @transform_0(%arg0: i32, %arg1: i32) -> (i32, i32) {
    %c0_i32 = arith.constant 0 : i32
    return %arg0, %arg1 : i32, i32
  }
  func.func @transform_1(%arg0: i32, %arg1: i32) -> (i32, i32) {
    %c0_i32 = arith.constant 0 : i32
    return %arg0, %arg1 : i32, i32
  }
}

</mosaic_0001>

<bundles_post_ra>
// kernel: _identity_copy.1
= control target key start
LH: loop header
LB: loop body
LE: loop exit
PB: predicated region body
PF: predicated region fallthrough
CT: control target
= control target key end

     0   :  { %6 = vsyncpa [#allocation3], 0  ;;  %s104_s0 = inlined_call_operand.hbm [shape: f32[8,256], index: 0, kind: input, shape index: {}, may-alias: {0,1}]   ;;  %s105_s1 = inlined_call_operand.hbm [shape: f32[8,256], index: 1, kind: output, shape index: {}, may-alias: {0,1}]  }
   0x1   :  { %7 = vsyncpa [#allocation4], 0  ;;  %s86_s6 = smov [#allocation2]  }
   0x2   :  { %s14_s7 = sshll.u32 %s86_s6, 4  ;;  %s15_s7 = int_to_ptr.vmem [resolvable:$true] %s14_s7 }
   0x3   :  { %s50_s8 = scalar_lea.vmem %s15_s7, 256  ;;  %p55_p1 = scmp.lt.s32.totalorder %s15_s7, %s15_s7 }
   0x4   :  { %p51_p0 = scmp.ne.s32.totalorder %s15_s7, %s50_s8  ;;  %p56_p2 = scmp.lt.s32.totalorder %s50_s8, %s50_s8 }
   0x6   :  { %p57_p3 = por %p56_p2, %p55_p1 }
   0x8   :  { %p58_p4 = pnand %p57_p3, %p51_p0 }
   0xa   :  { %61 = shalt.err (!%p58_p4)
}
   0xb   :  { %17 = dma.hbm_to_vmem [thread:$0]  %s104_s0, 256, %s15_s7, [#allocation3]  }
   0xc   :  { %82 = dma.done.wait [#allocation3], 256  }
   0xd   :  { %83 = vsyncadd [#allocation3], 4294967040  ;;  %s87_s11 = smov [#allocation5]   ;;  %v21_v0 = vld [vmem:[#allocation2] sm:$0xff]  ;;  %v22_v1 = vld [vmem:[#allocation2 + $0x8] sm:$0xff] }
   0xe   :  { %s31_s12 = sshll.u32 %s87_s11, 4  ;;  %23 = vst [vmem:[#allocation5] sm:$0xff] %v21_v0  ;;  %24 = vst [vmem:[#allocation5 + $0x8] sm:$0xff] %v22_v1  ;;  %s32_s12 = int_to_ptr.vmem [resolvable:$true] %s31_s12 }
   0xf   :  { %s62_s13 = scalar_lea.vmem %s32_s12, 256  ;;  %p67_p6 = scmp.lt.s32.totalorder %s32_s12, %s32_s12 }
  0x10   :  { %p63_p5 = scmp.ne.s32.totalorder %s32_s12, %s62_s13  ;;  %p68_p7 = scmp.lt.s32.totalorder %s62_s13, %s62_s13 }
  0x12   :  { %p69_p8 = por %p68_p7, %p67_p6 }
  0x14   :  { %p70_p9 = pnand %p69_p8, %p63_p5 }
  0x16   :  { %73 = shalt.err (!%p70_p9)
}
  0x17   :  { %34 = dma.vmem_to_hbm [thread:$0]  %s32_s12, 256, %s105_s1, [#allocation4]  }
  0x18   :  { %84 = dma.done.wait [#allocation4], 256  }
  0x19   :  { %85 = vsyncadd [#allocation4], 4294967040 }
  0x1a   :  { %38 = vsyncpa [#allocation3], 1 }
  0x1b   :  { %39 = vsyncpa [#allocation4], 1 }

</bundles_post_ra>
